<compile_context>
chip_gen: v5e
topology: v5e:2x2
jax: 0.10.0
libtpu: 0.0.40
codegen_flags: <defaults>
</compile_context>

<pallas_src>
import jax
import jax.numpy as jnp
from jax import lax
from jax.experimental import pallas as pl
from jax.experimental.pallas import tpu as pltpu


_TARGET_X_BLOCK_BYTES = 2 << 20   # aim ~2 MiB of x per grid step (HBM-bound op)
_MAX_NB_UNROLL = 16               # cap on static per-batch unroll in the kernel


# ----------------------------- hardware queries ------------------------------


def _tpu_vmem_bytes():
    try:
        return int(pltpu.get_tpu_info().vmem_capacity_bytes)
    except Exception:
        return 64 << 20            # conservative default (v7x per-TensorCore)


def _vmem_db_budget_bytes():
    # Budget for double-buffered in/out blocks: ~1/3 of physical, <= 24 MiB.
    phys = _tpu_vmem_bytes()
    return int(min(24 << 20, max(8 << 20, phys // 3)))


def _is_v7x():
    try:
        return "v7" in jax.devices()[0].device_kind.lower()
    except Exception:
        return False


def _vmem_limit_bytes(block_bytes, w_bytes):
    # Actual footprint: double-buffered activation blocks + (double-buffered)
    # resident weight + headroom; never above ~90% of physical VMEM.
    usage = 2 * int(block_bytes) + 2 * int(w_bytes) + (2 << 20)
    return int(min(max(usage, 16 << 20), int(_tpu_vmem_bytes() * 0.9)))


# ------------------------------- kernels --------------------------------------


def _concat_pos_nchw_kernel(x_ref, w_ref, pos_ref, o_ref):
    # x_ref: [nb, C, T], w_ref: [Cout, C], pos_ref: [nb, P, T], o_ref: [nb, C, T]
    # Channel concat lives on the sublane axis -> two direct slice stores, and
    # the output block is lane-dense (T on lanes): unmasked vst.
    # Perf note: keep Cout / P multiples of the sublane packing (8 f32 / 16 bf16)
    # so the sublane-slice stores stay unmasked (true for Cout=32, P=32).
    cout = w_ref.shape[0]
    nb = x_ref.shape[0]
    w = w_ref[...]                                  # tiny; loaded once, reused
    for b in range(nb):                             # static unroll, nb <= _MAX_NB_UNROLL
        proj = jnp.dot(w, x_ref[b], preferred_element_type=jnp.float32)
        o_ref[b, :cout, :] = proj.astype(o_ref.dtype)
        o_ref[b, cout:, :] = pos_ref[b].astype(o_ref.dtype)


def _concat_pos_rows_kernel(x_ref, w_ref, pos_ref, o_ref):
    # 2-D path, only used when C / Cout are multiples of 128 so the lane-split
    # stores below are unmasked. x_ref: [R, C], w_ref: [Cout, C],
    # pos_ref: [R, P], o_ref: [R, C].
    cout = w_ref.shape[0]
    proj = lax.dot_general(
        x_ref[...], w_ref[...],
        dimension_numbers=(((1,), (1,)), ((), ())),   # x @ w.T, no in-kernel transpose
        preferred_element_type=jnp.float32)
    o_ref[:, :cout] = proj.astype(o_ref.dtype)
    o_ref[:, cout:] = pos_ref[...].astype(o_ref.dtype)


# ------------------------------- tiling ----------------------------------------


def _pick_nchw_tiles(n, c, p, hw, itemsize):
    """Choose (nb, hw_tile): batch block and lane tile, byte-budget driven."""
    budget = _vmem_db_budget_bytes()
    x_bytes_per_lane = c * itemsize
    tot_bytes_per_lane = (2 * c + p) * itemsize       # x + out + pos per lane column

    want_lanes = _TARGET_X_BLOCK_BYTES // max(x_bytes_per_lane, 1)
    vmem_lanes = budget // max(2 * tot_bytes_per_lane, 1)
    lanes = max(128, min(want_lanes, vmem_lanes))

    if hw <= lanes:
        hw_tile = hw                                   # full last dim: always legal
    else:
        hw_tile = max(128, (lanes // 128) * 128)       # multiple of 128, ragged tail masked

    # Fold several batches into one step when a full-HW block is still small.
    nb = 1
    if hw_tile == hw and n > 1:
        per_batch_x = x_bytes_per_lane * hw
        per_batch_tot = tot_bytes_per_lane * hw
        nb = min(n, _MAX_NB_UNROLL,
                 max(1, _TARGET_X_BLOCK_BYTES // max(per_batch_x, 1)),
                 max(1, budget // max(2 * per_batch_tot, 1)))
        nb = max(1, nb)

    # v7x has 2 TensorCores: make sure the grid has >= 2 steps when possible.
    if _is_v7x():
        steps = (-(-n // nb)) * (-(-hw // hw_tile))
        if steps < 2:
            if n >= 2:
                nb = -(-n // 2)
            elif hw >= 256:
                hw_tile = max(128, ((hw // 2) // 128) * 128)

    return int(nb), int(hw_tile)


# ------------------------------- wrappers ---------------------------------------


def _concat_pos_nchw(x3, w, pos3):
    """x3: [N, C, HW], w: [Cout, C], pos3: [N, P, HW] -> [N, C, HW]."""
    n, c, hw = x3.shape
    cout, p = w.shape[0], pos3.shape[1]
    assert cout + p == c, "projection channels + pos channels must equal C"

    itemsize = jnp.dtype(x3.dtype).itemsize
    w_itemsize = jnp.dtype(w.dtype).itemsize
    nb, hw_tile = _pick_nchw_tiles(n, c, p, hw, itemsize)
    n_b = -(-n // nb)
    n_hw = -(-hw // hw_tile)

    cost = pl.CostEstimate(
        flops=2 * n * hw * cout * c,
        transcendentals=0,
        bytes_accessed=itemsize * n * hw * (2 * c + p) + w_itemsize * cout * c,
    )
    block_bytes = nb * (2 * c + p) * hw_tile * itemsize
    vmem_limit = _vmem_limit_bytes(block_bytes, cout * c * w_itemsize)

    return pl.pallas_call(
        _concat_pos_nchw_kernel,
        out_shape=jax.ShapeDtypeStruct((n, c, hw), x3.dtype),
        grid_spec=pltpu.PrefetchScalarGridSpec(
            num_scalar_prefetch=0,
            grid=(n_b, n_hw),
            in_specs=[
                pl.BlockSpec((nb, c, hw_tile), lambda b, j: (b, 0, j)),
                # Full weight stays resident in VMEM (tiny at these sizes).
                # TODO(synk): tile the contraction (C) dim if C grows to thousands.
                pl.BlockSpec((cout, c), lambda b, j: (0, 0)),
                pl.BlockSpec((nb, p, hw_tile), lambda b, j: (b, 0, j)),
            ],
            out_specs=pl.BlockSpec((nb, c, hw_tile), lambda b, j: (b, 0, j)),
        ),
        compiler_params=pltpu.CompilerParams(
            dimension_semantics=("parallel", "parallel"),
            vmem_limit_bytes=vmem_limit),
        cost_estimate=cost,
    )(x3, w, pos3)


def _concat_pos_rows_aligned(x, w, pos):
    """2-D path with 128-lane-aligned channel split. x: [R, C] -> [R, C]."""
    r, c = x.shape
    cout, p = w.shape[0], pos.shape[1]
    itemsize = jnp.dtype(x.dtype).itemsize
    w_itemsize = jnp.dtype(w.dtype).itemsize

    budget = _vmem_db_budget_bytes()
    tot_per_row = (2 * c + p) * itemsize
    want_rows = _TARGET_X_BLOCK_BYTES // max(c * itemsize, 1)
    vmem_rows = budget // max(2 * tot_per_row, 1)
    tm = max(8, (min(want_rows, vmem_rows) // 8) * 8)
    if tm >= r:
        tm = r                                         # full-extent block is legal
    n_r = -(-r // tm)
    if _is_v7x() and n_r < 2 and r > 8:                # use both TensorCores
        tm = max(8, ((-(-r // 2) + 7) // 8) * 8)
        n_r = -(-r // tm)

    cost = pl.CostEstimate(
        flops=2 * r * cout * c,
        transcendentals=0,
        bytes_accessed=itemsize * r * (2 * c + p) + w_itemsize * cout * c,
    )
    vmem_limit = _vmem_limit_bytes(tm * tot_per_row, cout * c * w_itemsize)

    return pl.pallas_call(
        _concat_pos_rows_kernel,
        out_shape=jax.ShapeDtypeStruct((r, c), x.dtype),
        grid_spec=pltpu.PrefetchScalarGridSpec(
            num_scalar_prefetch=0,
            grid=(n_r,),
            in_specs=[
                pl.BlockSpec((tm, c), lambda i: (i, 0)),
                pl.BlockSpec((cout, c), lambda i: (0, 0)),
                pl.BlockSpec((tm, p), lambda i: (i, 0)),
            ],
            out_specs=pl.BlockSpec((tm, c), lambda i: (i, 0)),
        ),
        compiler_params=pltpu.CompilerParams(
            dimension_semantics=("parallel",),
            vmem_limit_bytes=vmem_limit),
        cost_estimate=cost,
    )(x, w, pos)


def _concat_pos_rows(x, w, pos):
    """2-D path. x: [R, C], w: [Cout, C], pos: [R, P] -> [R, C]."""
    c = x.shape[1]
    cout, p = w.shape[0], pos.shape[1]
    assert cout + p == c
    if c % 128 == 0 and cout % 128 == 0:
        # Lane-aligned split -> direct rows kernel with unmasked lane stores.
        return _concat_pos_rows_aligned(x, w, pos)
    # Small / unaligned C: lane-split stores would be masked (vst.msk) and the
    # output lane-sparse. Present channels on the sublane axis instead: the
    # concat becomes two unmasked sublane-slice stores on a lane-dense [C, R]
    # output. The two wrapper transposes are cheap XLA ops at these sizes.
    out_t = _concat_pos_nchw(x.T[None], w, pos.T[None])[0]
    return out_t.T


def concat_pos_forward(x, pos, conv_weight, *, activation_dtype=None):
    """Reproduces ConcatPos.forward.

    conv_weight: [C-P, C, 1, 1]  (PyTorch Conv2d weight layout)
    4-D path: x NCHW [N, C, H, W], pos NCHW [N, P, H, W] -> [N, C, H, W]
    2-D path: x [N, C], pos [N, P] -> [N, C]
    activation_dtype: optionally run the HBM-bound kernel in bf16 (x, pos, w
    cast before the pallas_call; accumulation stays f32 inside the kernel).
    """
    cout, c = conv_weight.shape[0], conv_weight.shape[1]
    w = conv_weight.reshape(cout, c)                   # [Cout, C]
    if activation_dtype is not None:
        x = x.astype(activation_dtype)
        pos = pos.astype(activation_dtype)
        w = w.astype(activation_dtype)

    if x.ndim != 2:
        n, cx, h, ww = x.shape
        p = pos.shape[1]
        x3 = x.reshape(n, cx, h * ww)                  # free reshape, no transpose
        pos3 = pos.reshape(n, p, h * ww)
        out3 = _concat_pos_nchw(x3, w, pos3)
        return out3.reshape(n, cx, h, ww)              # free reshape back to NCHW
    else:
        return _concat_pos_rows(x, w, pos)


# -------------------------------- test -------------------------------------------


if __name__ == "__main__":
    embedd_size = 64       # C
    pos_embedd_size = 32   # P
    N, H, W = 2, 16, 16

    key = jax.random.PRNGKey(0)
    k1, k2, k3, k4, k5, k6, k7 = jax.random.split(key, 7)

    # Deterministic synthetic Conv2d(C, C-P, 1, bias=False) weight: [C-P, C, 1, 1]
    conv_weight = jax.random.normal(
        k1, (embedd_size - pos_embedd_size, embedd_size, 1, 1), dtype=jnp.float32
    ) * 0.05

    # ---- 4-D path (NCHW, like the PyTorch Conv2d input) ----
    x4 = jax.random.normal(k2, (N, embedd_size, H, W), dtype=jnp.float32)
    pos4 = jax.random.normal(k3, (N, pos_embedd_size, H, W), dtype=jnp.float32)
    out4 = jax.block_until_ready(concat_pos_forward(x4, pos4, conv_weight))

    w_mat = conv_weight.reshape(embedd_size - pos_embedd_size, embedd_size).T
    ref_proj = jnp.einsum("nchw,cd->ndhw", x4, w_mat)
    ref4 = jnp.concatenate([ref_proj, pos4], axis=1)
    assert out4.shape == (N, embedd_size, H, W)
    assert jnp.allclose(out4, ref4, atol=1e-3, rtol=1e-3)

    # ---- bf16 activation path (HBM-bandwidth saver), loose tolerance ----
    out4_bf = jax.block_until_ready(
        concat_pos_forward(x4, pos4, conv_weight, activation_dtype=jnp.bfloat16))
    assert out4_bf.dtype == jnp.bfloat16
    assert jnp.allclose(out4_bf.astype(jnp.float32), ref4, atol=5e-2, rtol=5e-2)

    # ---- 2-D path, small / unaligned C (routes via channel-on-sublane kernel) ----
    x2 = jax.random.normal(k4, (8, embedd_size), dtype=jnp.float32)
    pos2 = jax.random.normal(k5, (8, pos_embedd_size), dtype=jnp.float32)
    out2 = jax.block_until_ready(concat_pos_forward(x2, pos2, conv_weight))
    ref2 = jnp.concatenate([x2 @ w_mat, pos2], axis=-1)
    assert out2.shape == (8, embedd_size)
    assert jnp.allclose(out2, ref2, atol=1e-3, rtol=1e-3)

    # ---- 2-D path, 128-lane-aligned C (direct rows kernel, unmasked lane stores) ----
    C_big, P_big, R_big = 256, 128, 300
    w_big = jax.random.normal(
        k6, (C_big - P_big, C_big, 1, 1), dtype=jnp.float32) * 0.05
    x2b = jax.random.normal(k7, (R_big, C_big), dtype=jnp.float32)
    pos2b = jax.random.normal(jax.random.PRNGKey(1), (R_big, P_big), dtype=jnp.float32)
    out2b = jax.block_until_ready(concat_pos_forward(x2b, pos2b, w_big))
    w_big_mat = w_big.reshape(C_big - P_big, C_big).T
    ref_proj_b = jnp.dot(x2b, w_big_mat, precision=jax.lax.Precision.HIGHEST)
    ref2b = jnp.concatenate([ref_proj_b, pos2b], axis=-1)
    assert out2b.shape == (R_big, C_big)
    assert jnp.allclose(out2b, ref2b, atol=2e-2, rtol=2e-2)

    print("KERNEL_OK")
</pallas_src>

<mosaic_0001>
module attributes {stable_mosaic.version = 11 : i64} {
  func.func @_concat_pos_nchw_kernel(%arg0: i32, %arg1: i32, %arg2: memref<2x64x256xf32, #tpu.memory_space<vmem>>, %arg3: memref<32x64xf32, #tpu.memory_space<vmem>>, %arg4: memref<2x32x256xf32, #tpu.memory_space<vmem>>, %arg5: memref<2x64x256xf32, #tpu.memory_space<vmem>>) attributes {dimension_semantics = [#tpu.dimension_semantics<parallel>, #tpu.dimension_semantics<parallel>], iteration_bounds = array<i64: 1, 1>, scalar_prefetch = 0 : i64, scratch_operands = 0 : i64, tpu.core_type = #tpu.core_type<tc>, window_params = [{transform_indices = @transform_0, window_bounds = array<i64: 2, 64, 256>}, {pipeline_mode = #tpu.pipeline_mode<synchronous>, transform_indices = @transform_1, window_bounds = array<i64: 32, 64>}, {transform_indices = @transform_2, window_bounds = array<i64: 2, 32, 256>}, {transform_indices = @transform_3, window_bounds = array<i64: 2, 64, 256>}]} {
    %c0 = arith.constant 0 : index
    %c0_0 = arith.constant 0 : index
    %0 = vector.load %arg3[%c0, %c0_0] : memref<32x64xf32, #tpu.memory_space<vmem>>, vector<32x64xf32>
    %c0_1 = arith.constant 0 : index
    %c0_2 = arith.constant 0 : index
    %c0_3 = arith.constant 0 : index
    %1 = vector.load %arg2[%c0_1, %c0_2, %c0_3] : memref<2x64x256xf32, #tpu.memory_space<vmem>>, vector<1x64x256xf32>
    %2 = vector.shape_cast %1 : vector<1x64x256xf32> to vector<64x256xf32>
    %cst = arith.constant dense<0.000000e+00> : vector<32x256xf32>
    %3 = tpu.matmul %0, %2, %cst {dimension_numbers = #tpu.dot_dimension_numbers<[1], [0], [0], [1], [0, 0, 1, 1], [], []>} : vector<32x64xf32>, vector<64x256xf32>, vector<32x256xf32> -> vector<32x256xf32>
    %c0_4 = arith.constant 0 : index
    %c0_5 = arith.constant 0 : index
    %c0_6 = arith.constant 0 : index
    %4 = vector.load %arg5[%c0_4, %c0_5, %c0_6] : memref<2x64x256xf32, #tpu.memory_space<vmem>>, vector<1x32x256xf32>
    %5 = vector.shape_cast %4 : vector<1x32x256xf32> to vector<32x256xf32>
    %6 = vector.shape_cast %3 : vector<32x256xf32> to vector<1x32x256xf32>
    tpu.vector_store %arg5[%c0_4, %c0_5, %c0_6], %6 {strides = array<i32>} : memref<2x64x256xf32, #tpu.memory_space<vmem>>, vector<1x32x256xf32>,
    %c0_7 = arith.constant 0 : index
    %c0_8 = arith.constant 0 : index
    %c0_9 = arith.constant 0 : index
    %7 = vector.load %arg4[%c0_7, %c0_8, %c0_9] : memref<2x32x256xf32, #tpu.memory_space<vmem>>, vector<1x32x256xf32>
    %8 = vector.shape_cast %7 : vector<1x32x256xf32> to vector<32x256xf32>
    %c0_10 = arith.constant 0 : index
    %c32 = arith.constant 32 : index
    %c0_11 = arith.constant 0 : index
    %9 = vector.load %arg5[%c0_10, %c32, %c0_11] : memref<2x64x256xf32, #tpu.memory_space<vmem>>, vector<1x32x256xf32>
    %10 = vector.shape_cast %9 : vector<1x32x256xf32> to vector<32x256xf32>
    %11 = vector.shape_cast %8 : vector<32x256xf32> to vector<1x32x256xf32>
    tpu.vector_store %arg5[%c0_10, %c32, %c0_11], %11 {strides = array<i32>} : memref<2x64x256xf32, #tpu.memory_space<vmem>>, vector<1x32x256xf32>,
    %c1 = arith.constant 1 : index
    %c0_12 = arith.constant 0 : index
    %c0_13 = arith.constant 0 : index
    %12 = vector.load %arg2[%c1, %c0_12, %c0_13] : memref<2x64x256xf32, #tpu.memory_space<vmem>>, vector<1x64x256xf32>
    %13 = vector.shape_cast %12 : vector<1x64x256xf32> to vector<64x256xf32>
    %cst_14 = arith.constant dense<0.000000e+00> : vector<32x256xf32>
    %14 = tpu.matmul %0, %13, %cst_14 {dimension_numbers = #tpu.dot_dimension_numbers<[1], [0], [0], [1], [0, 0, 1, 1], [], []>} : vector<32x64xf32>, vector<64x256xf32>, vector<32x256xf32> -> vector<32x256xf32>
    %c1_15 = arith.constant 1 : index
    %c0_16 = arith.constant 0 : index
    %c0_17 = arith.constant 0 : index
    %15 = vector.load %arg5[%c1_15, %c0_16, %c0_17] : memref<2x64x256xf32, #tpu.memory_space<vmem>>, vector<1x32x256xf32>
    %16 = vector.shape_cast %15 : vector<1x32x256xf32> to vector<32x256xf32>
    %17 = vector.shape_cast %14 : vector<32x256xf32> to vector<1x32x256xf32>
    tpu.vector_store %arg5[%c1_15, %c0_16, %c0_17], %17 {strides = array<i32>} : memref<2x64x256xf32, #tpu.memory_space<vmem>>, vector<1x32x256xf32>,
    %c1_18 = arith.constant 1 : index
    %c0_19 = arith.constant 0 : index
    %c0_20 = arith.constant 0 : index
    %18 = vector.load %arg4[%c1_18, %c0_19, %c0_20] : memref<2x32x256xf32, #tpu.memory_space<vmem>>, vector<1x32x256xf32>
    %19 = vector.shape_cast %18 : vector<1x32x256xf32> to vector<32x256xf32>
    %c1_21 = arith.constant 1 : index
    %c32_22 = arith.constant 32 : index
    %c0_23 = arith.constant 0 : index
    %20 = vector.load %arg5[%c1_21, %c32_22, %c0_23] : memref<2x64x256xf32, #tpu.memory_space<vmem>>, vector<1x32x256xf32>
    %21 = vector.shape_cast %20 : vector<1x32x256xf32> to vector<32x256xf32>
    %22 = vector.shape_cast %19 : vector<32x256xf32> to vector<1x32x256xf32>
    tpu.vector_store %arg5[%c1_21, %c32_22, %c0_23], %22 {strides = array<i32>} : memref<2x64x256xf32, #tpu.memory_space<vmem>>, vector<1x32x256xf32>,
    return
  }
  func.func @transform_0(%arg0: i32, %arg1: i32) -> (i32, i32, i32) {
    %c0_i32 = arith.constant 0 : i32
    %c0_i32_0 = arith.constant 0 : i32
    return %arg0, %c0_i32, %arg1 : i32, i32, i32
  }
  func.func @transform_1(%arg0: i32, %arg1: i32) -> (i32, i32) {
    %c0_i32 = arith.constant 0 : i32
    %c0_i32_0 = arith.constant 0 : i32
    %c0_i32_1 = arith.constant 0 : i32
    return %c0_i32, %c0_i32_0 : i32, i32
  }
  func.func @transform_2(%arg0: i32, %arg1: i32) -> (i32, i32, i32) {
    %c0_i32 = arith.constant 0 : i32
    %c0_i32_0 = arith.constant 0 : i32
    return %arg0, %c0_i32, %arg1 : i32, i32, i32
  }
  func.func @transform_3(%arg0: i32, %arg1: i32) -> (i32, i32, i32) {
    %c0_i32 = arith.constant 0 : i32
    %c0_i32_0 = arith.constant 0 : i32
    return %arg0, %c0_i32, %arg1 : i32, i32, i32
  }
}

</mosaic_0001>

<bundles_post_ra>
// kernel: tpu_custom_call.1
= control target key start
LH: loop header
LB: loop body
LE: loop exit
PB: predicated region body
PF: predicated region fallthrough
CT: control target
= control target key end

     0   :  { %8 = vsyncpa [#allocation3], 0  ;;  %s489_s0 = inlined_call_operand.hbm [shape: f32[2,64,256], index: 0, kind: input, shape index: {}]   ;;  %s490_s1 = inlined_call_operand.hbm [shape: f32[32,64], index: 1, kind: input, shape index: {}]   ;;  %s491_s2 = inlined_call_operand.hbm [shape: f32[2,32,256], index: 2, kind: input, shape index: {}]   ;;  %s492_s3 = inlined_call_operand.hbm [shape: f32[2,64,256], index: 3, kind: output, shape index: {}]  }
   0x1   :  { %9 = vsyncpa [#allocation6], 0  ;;  %s28_s14 = sshll.u32 %s490_s1, 4  ;;  %s29_s14 = int_to_ptr.hbm [resolvable:$true] %s28_s14 }
   0x2   :  { %10 = vsyncpa [#allocation4], 0  ;;  %s424_s15 = smov [#allocation5]   ;;  %s15_s19 = sshll.u32 %s489_s0, 4  ;;  %s16_s19 = int_to_ptr.hbm [resolvable:$true] %s15_s19 }
   0x3   :  { %s30_s16 = sshll.u32 %s424_s15, 4  ;;  %s425_s20 = smov 128   ;;  %s31_s16 = int_to_ptr.vmem [resolvable:$true] %s30_s16 }
   0x4   :  { %s426_s21 = smov 8   ;;  %s427_s22 = smov [#allocation2]  }
   0x5   :  { %36 = dma.hbm_to_vmem [thread:$0]  %s29_s14, 512, %s31_s16, [#allocation6], %s425_s20, %s425_s20, %s426_s21  }
   0x6   :  { %s17_s23 = sshll.u32 %s427_s22, 4  ;;  %s428_s24 = smov 256   ;;  %s18_s23 = int_to_ptr.vmem [resolvable:$true] %s17_s23 }
   0x7   :  { %s429_s25 = smov 16   ;;  %s41_s27 = sshll.u32 %s491_s2, 4  ;;  %s42_s27 = int_to_ptr.hbm [resolvable:$true] %s41_s27 }
   0x8   :  { %23 = dma.hbm_to_vmem [thread:$0]  %s16_s19, 4096, %s18_s23, [#allocation3], %s428_s24, %s428_s24, %s429_s25  }
   0x9   :  { %s430_s28 = smov [#allocation7]  }
   0xa   :  { %s43_s0 = sshll.u32 %s430_s28, 4  ;;  %s44_s0 = int_to_ptr.vmem [resolvable:$true] %s43_s0 }
   0xb   :  { %49 = dma.hbm_to_vmem [thread:$0]  %s42_s27, 2048, %s44_s0, [#allocation6], %s428_s24, %s428_s24, %s429_s25  }
   0xc   :  { %418 = dma.done.wait [#allocation3], 4096  }
   0xd   :  { %419 = vsyncadd [#allocation3], 4294963200 }
   0xe   :  { %420 = dma.done.wait [#allocation6], 2560  }
   0xf   :  { %421 = vsyncadd [#allocation6], 4294964736  ;;  %v192_v0 = vld [vmem:[#allocation2 + $0xf0] sm:$0xff]  ;;  %v193_v1 = vld [vmem:[#allocation2 + $0xf8] sm:$0xff]  ;;  %vm82_vm0 = vcmask 523264   ;;  %s431_s2 = smov [#allocation8]  }
  0x10   :  { %v190_v2 = vld [vmem:[#allocation2 + $0xe0] sm:$0xff]  ;;  %202 = vmatpush.msra.mxu2 %v192_v0  ;;  %231 = vmatpush.msra.mxu3 %v193_v1  ;;  %v191_v3 = vld [vmem:[#allocation2 + $0xe8] sm:$0xff]  ;;  %v188_v4 = vld [vmem:[#allocation2 + $0xd0] sm:$0xff]  ;;  %s282_s29 = sshll.u32 %s431_s2, 4  ;;  %s284_s5 = sshll.u32 %s492_s3, 4  ;;  %s283_s29 = int_to_ptr.vmem [resolvable:$true] %s282_s29  ;;  %s285_s5 = int_to_ptr.hbm [resolvable:$true] %s284_s5 }
  0x11   :  { %v189_v5 = vld [vmem:[#allocation2 + $0xd8] sm:$0xff]  ;;  %v80_v6 = vld [vmem:[#allocation2 + $0x70] sm:$0xff]  ;;  %v78_v8 = vld [vmem:[#allocation2 + $0x60] sm:$0xff] }
  0x12   :  { %v81_v7 = vld [vmem:[#allocation2 + $0x78] sm:$0xff]  ;;  %203 = vmatpush.msra.mxu2 %v190_v2  ;;  %232 = vmatpush.msra.mxu3 %v191_v3  ;;  %v79_v9 = vld [vmem:[#allocation2 + $0x68] sm:$0xff]  ;;  %v186_v10 = vld [vmem:[#allocation2 + $0xc0] sm:$0xff] }
  0x13   :  { %103 = vmatpush.msra.mxu0 %v80_v6  ;;  %132 = vmatpush.msra.mxu1 %v81_v7  ;;  %v187_v11 = vld [vmem:[#allocation2 + $0xc8] sm:$0xff]  ;;  %v76_v12 = vld [vmem:[#allocation2 + $0x50] sm:$0xff]  ;;  %v77_v13 = vld [vmem:[#allocation2 + $0x58] sm:$0xff] }
  0x14   :  { %204 = vmatpush.msra.mxu2 %v188_v4  ;;  %233 = vmatpush.msra.mxu3 %v189_v5  ;;  %v184_v14 = vld [vmem:[#allocation2 + $0xb0] sm:$0xff]  ;;  %v185_v15 = vld [vmem:[#allocation2 + $0xb8] sm:$0xff]  ;;  %v74_v16 = vld [vmem:[#allocation2 + $0x40] sm:$0xff] }
  0x15   :  { %104 = vmatpush.msra.mxu0 %v78_v8  ;;  %133 = vmatpush.msra.mxu1 %v79_v9  ;;  %v75_v17 = vld [vmem:[#allocation2 + $0x48] sm:$0xff]  ;;  %v182_v18 = vld [vmem:[#allocation2 + $0xa0] sm:$0xff]  ;;  %v72_v20 = vld [vmem:[#allocation2 + $0x30] sm:$0xff] }
  0x16   :  { %205 = vmatpush.msra.mxu2 %v186_v10  ;;  %234 = vmatpush.msra.mxu3 %v187_v11  ;;  %v183_v19 = vld [vmem:[#allocation2 + $0xa8] sm:$0xff]  ;;  %v73_v21 = vld [vmem:[#allocation2 + $0x38] sm:$0xff]  ;;  %v180_v22 = vld [vmem:[#allocation2 + $0x90] sm:$0xff] }
  0x17   :  { %105 = vmatpush.msra.mxu0 %v76_v12  ;;  %134 = vmatpush.msra.mxu1 %v77_v13  ;;  %v181_v23 = vld [vmem:[#allocation2 + $0x98] sm:$0xff]  ;;  %v70_v24 = vld [vmem:[#allocation2 + $0x20] sm:$0xff]  ;;  %v71_v25 = vld [vmem:[#allocation2 + $0x28] sm:$0xff] }
  0x18   :  { %206 = vmatpush.msra.mxu2 %v184_v14  ;;  %235 = vmatpush.msra.mxu3 %v185_v15  ;;  %v178_v26 = vld [vmem:[#allocation2 + $0x80] sm:$0xff]  ;;  %v179_v27 = vld [vmem:[#allocation2 + $0x88] sm:$0xff]  ;;  %v68_v29 = vld [vmem:[#allocation2 + $0x10] sm:$0xff] }
  0x19   :  { %106 = vmatpush.msra.mxu0 %v74_v16  ;;  %135 = vmatpush.msra.mxu1 %v75_v17  ;;  %v62_v28 = vld [vmem:[#allocation5] sm:$0xff]  ;;  %v69_v30 = vld [vmem:[#allocation2 + $0x18] sm:$0xff]  ;;  %v67_v32 = vld [vmem:[#allocation2 + $0x8] sm:$0xff] }
  0x1a   :  { %207 = vmatpush.msra.mxu2 %v182_v18  ;;  %236 = vmatpush.msra.mxu3 %v183_v19  ;;  %v66_v31 = vld [vmem:[#allocation2] sm:$0xff]  ;;  %v63_v33 = vld [vmem:[#allocation5 + $0x8] sm:$0xff]  ;;  %v64_v34 = vld [vmem:[#allocation5 + $0x10] sm:$0xff] }
  0x1b   :  { %107 = vmatpush.msra.mxu0 %v72_v20  ;;  %136 = vmatpush.msra.mxu1 %v73_v21  ;;  %v65_v35 = vld [vmem:[#allocation5 + $0x18] sm:$0xff]  ;;  %v161_v36 = vld [vmem:[#allocation7] sm:$0xff]  ;;  %v162_v37 = vld [vmem:[#allocation7 + $0x8] sm:$0xff] }
  0x1c   :  { %208 = vmatpush.msra.mxu2 %v180_v22  ;;  %237 = vmatpush.msra.mxu3 %v181_v23  ;;  %v163_v38 = vld [vmem:[#allocation7 + $0x10] sm:$0xff]  ;;  %v164_v39 = vld [vmem:[#allocation7 + $0x18] sm:$0xff]  ;;  %169 = vst [vmem:[#allocation8 + $0x40] sm:$0xff] %v161_v36  ;;  %v165_v40 = vld [vmem:[#allocation7 + $0x20] sm:$0xff] }
  0x1d   :  { %108 = vmatpush.msra.mxu0 %v70_v24  ;;  %137 = vmatpush.msra.mxu1 %v71_v25  ;;  %170 = vst [vmem:[#allocation8 + $0x48] sm:$0xff] %v162_v37  ;;  %v166_v45 = vld [vmem:[#allocation7 + $0x28] sm:$0xff]  ;;  %v167_v46 = vld [vmem:[#allocation7 + $0x30] sm:$0xff]  ;;  %v168_v47 = vld [vmem:[#allocation7 + $0x38] sm:$0xff] }
  0x1e   :  { %209 = vmatpush.msra.mxu2 %v178_v26  ;;  %238 = vmatpush.msra.mxu3 %v179_v27  ;;  %171 = vst [vmem:[#allocation8 + $0x50] sm:$0xff] %v163_v38  ;;  %v262_v48 = vld [vmem:[#allocation7 + $0x40] sm:$0xff]  ;;  %v263_v53 = vld [vmem:[#allocation7 + $0x48] sm:$0xff]  ;;  %v264_v54 = vld [vmem:[#allocation7 + $0x50] sm:$0xff] }
  0x1f   :  { %306 = vmatmul.msk.f32.vlgmr.msra.gmra.mxu2 %vm82_vm0, %v62_v28  ;;  %310 = vmatmul.msk.f32.vlgmr.msra.gmra.mxu3 %vm82_vm0, %v62_v28  ;;  %172 = vst [vmem:[#allocation8 + $0x58] sm:$0xff] %v164_v39  ;;  %v265_v55 = vld [vmem:[#allocation7 + $0x58] sm:$0xff]  ;;  %v266_v56 = vld [vmem:[#allocation7 + $0x60] sm:$0xff]  ;;  %v267_v61 = vld [vmem:[#allocation7 + $0x68] sm:$0xff] }
  0x20   :  { %109 = vmatpush.msra.mxu0 %v68_v29  ;;  %138 = vmatpush.msra.mxu1 %v69_v30  ;;  %173 = vst [vmem:[#allocation8 + $0x60] sm:$0xff] %v165_v40  ;;  %v268_v62 = vld [vmem:[#allocation7 + $0x70] sm:$0xff]  ;;  %v269_v63 = vld [vmem:[#allocation7 + $0x78] sm:$0xff] }
  0x21   :  { %174 = vst [vmem:[#allocation8 + $0x68] sm:$0xff] %v166_v45 }
  0x22   :  { %110 = vmatpush.msra.mxu0 %v66_v31  ;;  %139 = vmatpush.msra.mxu1 %v67_v32  ;;  %175 = vst [vmem:[#allocation8 + $0x70] sm:$0xff] %v167_v46 }
  0x23   :  { %298 = vmatmul.msk.f32.vlgmr.msra.gmra.mxu0 %vm82_vm0, %v62_v28  ;;  %302 = vmatmul.msk.f32.vlgmr.msra.gmra.mxu1 %vm82_vm0, %v62_v28  ;;  %176 = vst [vmem:[#allocation8 + $0x78] sm:$0xff] %v168_v47 }
  0x24   :  { %270 = vst [vmem:[#allocation8 + $0xc0] sm:$0xff] %v262_v48 }
  0x25   :  { %271 = vst [vmem:[#allocation8 + $0xc8] sm:$0xff] %v263_v53 }
  0x26   :  { %272 = vst [vmem:[#allocation8 + $0xd0] sm:$0xff] %v264_v54 }
  0x27   :  { %307 = vmatmul.msk.f32.gmra.mxu2 %vm82_vm0, %v63_v33  ;;  %311 = vmatmul.msk.f32.gmra.mxu3 %vm82_vm0, %v63_v33  ;;  %273 = vst [vmem:[#allocation8 + $0xd8] sm:$0xff] %v265_v55 }
  0x28   :  { %274 = vst [vmem:[#allocation8 + $0xe0] sm:$0xff] %v266_v56 }
  0x29   :  { %275 = vst [vmem:[#allocation8 + $0xe8] sm:$0xff] %v267_v61 }
  0x2a   :  { %276 = vst [vmem:[#allocation8 + $0xf0] sm:$0xff] %v268_v62 }
  0x2b   :  { %299 = vmatmul.msk.f32.gmra.mxu0 %vm82_vm0, %v63_v33  ;;  %303 = vmatmul.msk.f32.gmra.mxu1 %vm82_vm0, %v63_v33  ;;  %277 = vst [vmem:[#allocation8 + $0xf8] sm:$0xff] %v269_v63 }
  0x2f   :  { %308 = vmatmul.msk.f32.gmra.mxu2 %vm82_vm0, %v64_v34  ;;  %312 = vmatmul.msk.f32.gmra.mxu3 %vm82_vm0, %v64_v34 }
  0x33   :  { %300 = vmatmul.msk.f32.gmra.mxu0 %vm82_vm0, %v64_v34  ;;  %304 = vmatmul.msk.f32.gmra.mxu1 %vm82_vm0, %v64_v34 }
  0x37   :  { %309 = vmatmul.msk.f32.gmra.mxu2 %vm82_vm0, %v65_v35  ;;  %313 = vmatmul.msk.f32.gmra.mxu3 %vm82_vm0, %v65_v35 }
  0x3b   :  { %301 = vmatmul.msk.f32.gmra.mxu0 %vm82_vm0, %v65_v35  ;;  %305 = vmatmul.msk.f32.gmra.mxu1 %vm82_vm0, %v65_v35 }
  0xa0   :  { %v112_v41 = vpop.f32.mrf.mxu0  ;;  %v141_v42 = vpop.f32.mrf.mxu1 }
  0xa1   :  { %153 = vst [vmem:[#allocation8] sm:$0xff] %v112_v41 }
  0xa2   :  { %154 = vst [vmem:[#allocation8 + $0x8] sm:$0xff] %v141_v42  ;;  %v211_v43 = vpop.f32.mrf.mxu2  ;;  %v240_v44 = vpop.f32.mrf.mxu3 }
  0xa3   :  { %253 = vst [vmem:[#allocation8 + $0x80] sm:$0xff] %v211_v43 }
  0xa4   :  { %254 = vst [vmem:[#allocation8 + $0x88] sm:$0xff] %v240_v44 }
  0xa8   :  { %v115_v49 = vpop.f32.mrf.mxu0  ;;  %v144_v50 = vpop.f32.mrf.mxu1 }
  0xa9   :  { %155 = vst [vmem:[#allocation8 + $0x10] sm:$0xff] %v115_v49 }
  0xaa   :  { %156 = vst [vmem:[#allocation8 + $0x18] sm:$0xff] %v144_v50  ;;  %v214_v51 = vpop.f32.mrf.mxu2  ;;  %v243_v52 = vpop.f32.mrf.mxu3 }
  0xab   :  { %255 = vst [vmem:[#allocation8 + $0x90] sm:$0xff] %v214_v51 }
  0xac   :  { %256 = vst [vmem:[#allocation8 + $0x98] sm:$0xff] %v243_v52 }
  0xb0   :  { %v118_v57 = vpop.f32.mrf.mxu0  ;;  %v147_v58 = vpop.f32.mrf.mxu1 }
  0xb1   :  { %157 = vst [vmem:[#allocation8 + $0x20] sm:$0xff] %v118_v57 }
  0xb2   :  { %158 = vst [vmem:[#allocation8 + $0x28] sm:$0xff] %v147_v58  ;;  %v217_v59 = vpop.f32.mrf.mxu2  ;;  %v246_v60 = vpop.f32.mrf.mxu3 }
  0xb3   :  { %257 = vst [vmem:[#allocation8 + $0xa0] sm:$0xff] %v217_v59 }
  0xb4   :  { %258 = vst [vmem:[#allocation8 + $0xa8] sm:$0xff] %v246_v60 }
  0xb8   :  { %v121_v0 = vpop.f32.mrf.mxu0  ;;  %v150_v1 = vpop.f32.mrf.mxu1 }
  0xb9   :  { %159 = vst [vmem:[#allocation8 + $0x30] sm:$0xff] %v121_v0 }
  0xba   :  { %160 = vst [vmem:[#allocation8 + $0x38] sm:$0xff] %v150_v1  ;;  %v220_v2 = vpop.f32.mrf.mxu2  ;;  %v249_v3 = vpop.f32.mrf.mxu3 }
  0xbb   :  { %259 = vst [vmem:[#allocation8 + $0xb0] sm:$0xff] %v220_v2 }
  0xbc   :  { %260 = vst [vmem:[#allocation8 + $0xb8] sm:$0xff] %v249_v3 }
  0xbd   :  { %290 = dma.vmem_to_hbm [thread:$0]  %s283_s29, 4096, %s285_s5, [#allocation4], %s428_s24, %s428_s24, %s429_s25  }
  0xbe   :  { %422 = dma.done.wait [#allocation4], 4096  }
  0xbf   :  { %423 = vsyncadd [#allocation4], 4294963200 }
  0xc0   :  { %295 = vsyncpa [#allocation3], 1 }
  0xc1   :  { %296 = vsyncpa [#allocation6], 1 }
  0xc2   :  { %297 = vsyncpa [#allocation4], 1 }

</bundles_post_ra>
